<compile_context>
chip_gen: v7x
topology: tpu7x:2x2x1
jax: 0.10.0
libtpu: 0.0.40
codegen_flags: <defaults>
</compile_context>

<pallas_src>
import jax
import jax.numpy as jnp
from jax.experimental import pallas as pl
from jax.experimental.pallas import tpu as pltpu


def _make_concat3_kernel_2d(f):
    """Lane-aligned path: f is a multiple of 128, output block is (tb, 3f)."""

    def kernel(x_ref, o_ref):
        xb = x_ref[...]
        for r in range(3):                       # static slices, unmasked vst
            o_ref[:, r * f:(r + 1) * f] = xb

    return kernel


def _concat3_kernel_3d(x_ref, o_ref):
    """General path: output block is (tb, 3, f); every store starts at lane 0."""
    xb = x_ref[...]
    for r in range(3):
        o_ref[:, r, :] = xb


def concat3_pallas(x_flat, *, target_tile_bytes=8 << 20):
    """torch.cat([x_flat, x_flat, x_flat], dim=1) as a tiled Pallas kernel."""
    b, f = x_flat.shape
    itemsize = jnp.dtype(x_flat.dtype).itemsize

    # Dtype-aware sublane packing: f32 -> 8 rows, bf16 -> 16, int8/fp8 -> 32.
    packing = max(1, 4 // itemsize)
    row_mult = 8 * packing

    # Biggest row tile whose output slab is ~target_tile_bytes.
    rows = target_tile_bytes // max(1, 3 * f * itemsize)
    rows = max(row_mult, (rows // row_mult) * row_mult)

    # Keep at least ~4 grid steps when the batch is big enough: lets both
    # v7x TensorCores issue DMAs and gives the pipeline iterations to overlap.
    if b >= 4 * row_mult:
        quarter = -(-b // 4)                                   # cdiv(b, 4)
        cap = ((quarter + row_mult - 1) // row_mult) * row_mult
        rows = min(rows, cap)

    tb = b if rows >= b else int(rows)          # full extent is always legal
    grid = (pl.cdiv(b, tb),)

    # Explicit VMEM budget: double-buffered input (tb*f) + output (tb*3f)
    # plus margin, capped well under v7x's 64 MiB physical VMEM.
    footprint = 2 * (tb * f + tb * 3 * f) * itemsize
    vmem_limit = int(min(max(footprint + (4 << 20), 16 << 20), 48 << 20))

    cost = pl.CostEstimate(
        flops=0,
        transcendentals=0,
        bytes_accessed=4 * b * f * itemsize,     # 1 read + 3 writes
    )
    cparams = pltpu.CompilerParams(
        dimension_semantics=("parallel",),
        vmem_limit_bytes=vmem_limit,
    )

    if f % 128 == 0:
        # Lane-aligned: one 2D output block, three unmasked sliced stores.
        return pl.pallas_call(
            _make_concat3_kernel_2d(f),
            out_shape=jax.ShapeDtypeStruct((b, 3 * f), x_flat.dtype),
            grid=grid,
            in_specs=[pl.BlockSpec((tb, f), lambda i: (i, 0))],
            out_specs=pl.BlockSpec((tb, 3 * f), lambda i: (i, 0)),
            compiler_params=cparams,
            cost_estimate=cost,
        )(x_flat)

    # General case: emit (b, 3, f) so no store needs a lane offset, then
    # reshape to (b, 3f) in the wrapper (free row-major relabel; memory layout
    # is identical to torch.cat(dim=1)).
    out3 = pl.pallas_call(
        _concat3_kernel_3d,
        out_shape=jax.ShapeDtypeStruct((b, 3, f), x_flat.dtype),
        grid=grid,
        in_specs=[pl.BlockSpec((tb, f), lambda i: (i, 0))],
        out_specs=pl.BlockSpec((tb, 3, f), lambda i: (i, 0, 0)),
        compiler_params=cparams,
        cost_estimate=cost,
    )(x_flat)
    return out3.reshape(b, 3 * f)


def model_forward(x, *, min_pallas_bytes=1 << 20):
    """Full forward pass of the PyTorch Model."""
    b = x.shape[0]
    x_flat = x.reshape(b, -1)  # the .view(B, -1); row-major, matches torch

    # Below ~1 MiB the pallas_call fixed cost dominates this pure-copy op, so
    # let XLA fuse a plain concatenate instead (the Pallas path is still
    # exercised explicitly in __main__).
    if x_flat.size * jnp.dtype(x_flat.dtype).itemsize < min_pallas_bytes:
        return jnp.concatenate([x_flat, x_flat, x_flat], axis=1)

    # Final .view(B, -1) is a no-op on the already-2D (B, 3F) result.
    return concat3_pallas(x_flat)


if __name__ == "__main__":
    key = jax.random.PRNGKey(0)
    # Matches the reference input: torch.randn(2, 3, 4)
    x = jax.random.normal(key, (2, 3, 4), dtype=jnp.float32)
    x_flat = x.reshape(x.shape[0], -1)

    # Exercise the Pallas kernel path explicitly.
    y_pallas = concat3_pallas(x_flat)
    jax.block_until_ready(y_pallas)

    # Full module forward (uses the small-size fast path at this shape).
    y_model = model_forward(x)
    jax.block_until_ready(y_model)

    # Reference check in plain JAX.
    y_ref = jnp.concatenate([x_flat, x_flat, x_flat], axis=1)
    assert y_pallas.shape == (2, 36), y_pallas.shape
    assert y_model.shape == (2, 36), y_model.shape
    assert jnp.array_equal(y_pallas, y_ref), "pallas kernel mismatch vs reference"
    assert jnp.array_equal(y_model, y_ref), "model_forward mismatch vs reference"

    print("KERNEL_OK")
</pallas_src>

<mosaic_0001>
module attributes {stable_mosaic.version = 11 : i64} {
  func.func @_concat3_kernel_3d(%arg0: i32, %arg1: memref<2x12xf32, #tpu.memory_space<vmem>>, %arg2: memref<2x3x12xf32, #tpu.memory_space<vmem>>) attributes {dimension_semantics = [#tpu.dimension_semantics<parallel>], iteration_bounds = array<i64: 1>, scalar_prefetch = 0 : i64, scratch_operands = 0 : i64, tpu.core_type = #tpu.core_type<tc>, window_params = [{transform_indices = @transform_0, window_bounds = array<i64: 2, 12>}, {transform_indices = @transform_1, window_bounds = array<i64: 2, 3, 12>}]} {
    %c0 = arith.constant 0 : index
    %c0_0 = arith.constant 0 : index
    %0 = vector.load %arg1[%c0, %c0_0] : memref<2x12xf32, #tpu.memory_space<vmem>>, vector<2x12xf32>
    %c0_1 = arith.constant 0 : index
    %c0_2 = arith.constant 0 : index
    %c0_3 = arith.constant 0 : index
    %1 = vector.load %arg2[%c0_1, %c0_2, %c0_3] : memref<2x3x12xf32, #tpu.memory_space<vmem>>, vector<2x1x12xf32>
    %2 = vector.shape_cast %1 : vector<2x1x12xf32> to vector<2x12xf32>
    %3 = vector.shape_cast %0 : vector<2x12xf32> to vector<2x1x12xf32>
    tpu.vector_store %arg2[%c0_1, %c0_2, %c0_3], %3 {strides = array<i32>} : memref<2x3x12xf32, #tpu.memory_space<vmem>>, vector<2x1x12xf32>,
    %c0_4 = arith.constant 0 : index
    %c1 = arith.constant 1 : index
    %c0_5 = arith.constant 0 : index
    %4 = vector.load %arg2[%c0_4, %c1, %c0_5] : memref<2x3x12xf32, #tpu.memory_space<vmem>>, vector<2x1x12xf32>
    %5 = vector.shape_cast %4 : vector<2x1x12xf32> to vector<2x12xf32>
    %6 = vector.shape_cast %0 : vector<2x12xf32> to vector<2x1x12xf32>
    tpu.vector_store %arg2[%c0_4, %c1, %c0_5], %6 {strides = array<i32>} : memref<2x3x12xf32, #tpu.memory_space<vmem>>, vector<2x1x12xf32>,
    %c0_6 = arith.constant 0 : index
    %c2 = arith.constant 2 : index
    %c0_7 = arith.constant 0 : index
    %7 = vector.load %arg2[%c0_6, %c2, %c0_7] : memref<2x3x12xf32, #tpu.memory_space<vmem>>, vector<2x1x12xf32>
    %8 = vector.shape_cast %7 : vector<2x1x12xf32> to vector<2x12xf32>
    %9 = vector.shape_cast %0 : vector<2x12xf32> to vector<2x1x12xf32>
    tpu.vector_store %arg2[%c0_6, %c2, %c0_7], %9 {strides = array<i32>} : memref<2x3x12xf32, #tpu.memory_space<vmem>>, vector<2x1x12xf32>,
    return
  }
  func.func @transform_0(%arg0: i32) -> (i32, i32) {
    %c0_i32 = arith.constant 0 : i32
    %c0_i32_0 = arith.constant 0 : i32
    return %arg0, %c0_i32 : i32, i32
  }
  func.func @transform_1(%arg0: i32) -> (i32, i32, i32) {
    %c0_i32 = arith.constant 0 : i32
    %c0_i32_0 = arith.constant 0 : i32
    %c0_i32_1 = arith.constant 0 : i32
    return %arg0, %c0_i32, %c0_i32_0 : i32, i32, i32
  }
}

</mosaic_0001>

<bundles_post_ra>
// kernel: tpu_custom_call.1
= control target key start
LH: loop header
LB: loop body
LE: loop exit
PB: predicated region body
PF: predicated region fallthrough
CT: control target
= control target key end

     0   :  { %6 = vsyncpa [#allocation3], 0  ;;  %s85_s6 = smov [#allocation2]   ;;  %s127_s0 = inlined_call_operand.hbm [shape: f32[2,12], index: 0, kind: input, shape index: {}]   ;;  %s128_s1 = inlined_call_operand.vmem [shape: f32[2,3,12], index: 1, kind: output, shape index: {}]  }
   0x1   :  { %s13_s7 = sshll.u32 %s85_s6, 4  ;;  %s61_s10 = scalar_lea.hbm %s127_s0, 32  ;;  %s14_s7 = int_to_ptr.vmem [resolvable:$true] %s13_s7 }
   0x2   :  { %p62_p0 = scmp.ne.s32.totalorder %s127_s0, %s61_s10  ;;  %p65_p1 = scmp.lt.u32.totalorder %s61_s10, %s127_s0 }
   0x4   :  { %p67_p2 = pnand %p65_p1, %p62_p0 }
   0x6   :  { %70 = shalt.err (!%p67_p2)
}
   0x7   :  { %s71_s15 = scalar_lea.vmem %s14_s7, 32  ;;  %p76_p4 = scmp.lt.s32.totalorder %s14_s7, %s14_s7 }
   0x8   :  { %p72_p3 = scmp.ne.s32.totalorder %s14_s7, %s71_s15  ;;  %p77_p5 = scmp.lt.s32.totalorder %s71_s15, %s71_s15 }
   0xa   :  { %p78_p6 = por %p77_p5, %p76_p4 }
   0xc   :  { %p79_p7 = pnand %p78_p6, %p72_p3 }
   0xe   :  { %82 = shalt.err (!%p79_p7)
}
   0xf   :  { %16 = dma.hbm_to_vmem [thread:$0]  %s127_s0, 32, %s14_s7, [#allocation3]  }
  0x10   :  { %83 = dma.done.wait [#allocation3], 32  }
  0x11   :  { %84 = vsyncadd [#allocation3], 4294967264  ;;  %v33_v0 = vlaneseq  ;;  %v86_v1 = vmov 1966171168   ;;  %vm46_vm0 = vcmask 90112  }
  0x12   :  { %v31_v2 = vunpack.c.l.s4 %v86_v1  ;;  %v58_v6 = vld.sshfl [vmem:[#allocation2] sm:$0x11 pattern:$0x75316420] }
  0x13   :  { %v34_v3 = vshrl.u32 %v33_v0, 7  ;;  %v29_v8 = vcombine.high %v58_v6, %v58_v6 }
  0x14   :  { %v32_v4 = vunpack.c.0.s8 %v31_v2 }
  0x16   :  { %v35_v5 = vsub.s32 %v32_v4, %v34_v3 }
  0x18   :  { %v36_v7 = vrot.slane %v58_v6, %v35_v5  ;;  %v43_v9 = vrot.slane %v29_v8, %v35_v5 }
  0x1a   :  { %47 = vst.msk [vmem:[%s128_s1] sm:$0x1] %vm46_vm0, %v36_v7  ;;  %49 = vst.msk [vmem:[%s128_s1 + $0x1] sm:$0x1] %vm46_vm0, %v36_v7 }
  0x1b   :  { %51 = vst.msk [vmem:[%s128_s1 + $0x2] sm:$0x1] %vm46_vm0, %v36_v7  ;;  %48 = vst.msk [vmem:[%s128_s1 + $0x4] sm:$0x1] %vm46_vm0, %v43_v9 }
  0x1c   :  { %50 = vst.msk [vmem:[%s128_s1 + $0x5] sm:$0x1] %vm46_vm0, %v43_v9  ;;  %52 = vst.msk [vmem:[%s128_s1 + $0x6] sm:$0x1] %vm46_vm0, %v43_v9 }
  0x1d   :  { %57 = vsyncpa [#allocation3], 1 }

</bundles_post_ra>
